<compile_context>
chip_gen: v6e
topology: v6e:2x2x1
jax: 0.10.0
libtpu: 0.0.40
codegen_flags: <defaults>
</compile_context>

<pallas_src>
import math

import jax
import jax.numpy as jnp
from jax.experimental import pallas as pl
from jax.experimental.pallas import tpu as pltpu


# ----------------------------- kernel ---------------------------------------


def _leftmod_w_kernel(w_ref, mo_ref, mi_ref, ao_ref, ai_ref, o_ref):
    """One (tile_out, tile_in) tile of  w_hat = w * (mo @ mi) + (ao @ ai).

    mo/ao are (tile_out, rank); mi/ai are pre-transposed, lane-dense
    (rank, tile_in) tiles, so there is no in-kernel transpose.  The two
    rank-R matmuls hit the MXU with f32 accumulation, the modulation is a
    fused elementwise VPU op; the kernel streams w -> w_hat from/to HBM.
    """
    w_mul = jnp.dot(mo_ref[...], mi_ref[...], preferred_element_type=jnp.float32)
    w_add = jnp.dot(ao_ref[...], ai_ref[...], preferred_element_type=jnp.float32)
    w = w_ref[...].astype(jnp.float32)
    o_ref[...] = (w * w_mul + w_add).astype(o_ref.dtype)


# ----------------------------- wrapper ---------------------------------------


def _pick_tile(dim, want, granule):
    """Largest tile <= `want` that divides `dim` and is a multiple of `granule`,
    falling back to the full dim (which always satisfies TPU block-shape rules)."""
    if dim <= want:
        return dim
    t = (want // granule) * granule
    while t >= granule:
        if dim % t == 0:
            return t
        t -= granule
    return dim


def left_weight_modulator_fc(w, params, b=None, *, tile_out=256, tile_in=1024):
    """Forward pass of LeFTWeightModulatorFC (rank is not None, left_use_add, bias).

    w: (out_dim, in_dim) float32 (or bf16) - torch.nn.Linear.weight layout
    b: (out_dim,) or None
    params: w_mul_out_dim (out_dim, rank), w_mul_in_dim (in_dim, rank),
            w_add_out_dim (out_dim, rank), w_add_in_dim (in_dim, rank),
            b_mul (out_dim,), b_add (out_dim,)
    """
    out_dim, in_dim = w.shape
    rank = params["w_mul_in_dim"].shape[1]

    # Large, lane-dense tiles; divisibility handled by picking divisors
    # (or the full dim, which is always a legal block shape).
    t_out = _pick_tile(out_dim, tile_out, 8)
    t_in = _pick_tile(in_dim, tile_in, 128)

    # Avoid a degenerate (1, 1) grid so both v7x TensorCores get work.
    if out_dim // t_out == 1 and in_dim // t_in == 1 and out_dim >= 16 and out_dim % 16 == 0:
        t_out = out_dim // 2

    grid = (out_dim // t_out, in_dim // t_in)

    # Pre-transpose the in-dim factors once (cheap XLA transpose) so the kernel
    # sees lane-dense (rank, tile_in) tiles and needs no in-kernel transpose.
    mi_t = params["w_mul_in_dim"].T  # (rank, in_dim)
    ai_t = params["w_add_in_dim"].T  # (rank, in_dim)

    w_bytes = jnp.dtype(w.dtype).itemsize
    f_bytes = jnp.dtype(params["w_mul_out_dim"].dtype).itemsize

    # Double-buffered VMEM footprint: w tile + w_hat tile + 4 small factor tiles.
    buffered = 2 * t_out * t_in * (w_bytes + w_bytes)
    buffered += 2 * 2 * rank * (t_out + t_in) * f_bytes
    # Raise the scoped-VMEM limit with headroom, but stay well under v7x's
    # 64 MiB physical VMEM (v5e default scoped is only 16 MiB).
    vmem_limit = int(min(48 * 1024 * 1024, max(32 * 1024 * 1024, 2 * buffered)))

    cost = pl.CostEstimate(
        flops=4 * out_dim * in_dim * rank + 2 * out_dim * in_dim,
        transcendentals=0,
        bytes_accessed=2 * out_dim * in_dim * w_bytes
        + 2 * rank * (out_dim + in_dim) * f_bytes,
    )

    w_hat = pl.pallas_call(
        _leftmod_w_kernel,
        out_shape=jax.ShapeDtypeStruct((out_dim, in_dim), w.dtype),
        grid_spec=pltpu.PrefetchScalarGridSpec(
            num_scalar_prefetch=0,
            grid=grid,
            in_specs=[
                pl.BlockSpec((t_out, t_in), lambda i, j: (i, j)),   # w
                pl.BlockSpec((t_out, rank), lambda i, j: (i, 0)),   # w_mul_out_dim
                pl.BlockSpec((rank, t_in), lambda i, j: (0, j)),    # w_mul_in_dim.T
                pl.BlockSpec((t_out, rank), lambda i, j: (i, 0)),   # w_add_out_dim
                pl.BlockSpec((rank, t_in), lambda i, j: (0, j)),    # w_add_in_dim.T
            ],
            out_specs=pl.BlockSpec((t_out, t_in), lambda i, j: (i, j)),
        ),
        compiler_params=pltpu.CompilerParams(
            dimension_semantics=("parallel", "parallel"),
            vmem_limit_bytes=vmem_limit,
        ),
        cost_estimate=cost,
    )(w, params["w_mul_out_dim"], mi_t, params["w_add_out_dim"], ai_t)

    # Bias path: a few-KB elementwise op -- plain jnp (no extra pallas_call launch).
    if b is not None:
        b_hat = (
            b.astype(jnp.float32) * params["b_mul"].astype(jnp.float32)
            + params["b_add"].astype(jnp.float32)
        ).astype(b.dtype)
    else:
        b_hat = None

    return w_hat, b_hat


def init_params(in_dim, out_dim, rank):
    """Deterministic parameter init exactly matching the module's __init__."""
    inv_sqrt_r = 1.0 / math.sqrt(rank)
    return {
        "w_mul_in_dim": jnp.ones((in_dim, rank), jnp.float32) * inv_sqrt_r,
        "w_mul_out_dim": jnp.ones((out_dim, rank), jnp.float32) * inv_sqrt_r,
        "w_add_in_dim": jnp.zeros((in_dim, rank), jnp.float32),
        "w_add_out_dim": jnp.zeros((out_dim, rank), jnp.float32),
        "b_mul": jnp.ones((out_dim,), jnp.float32),
        "b_add": jnp.zeros((out_dim,), jnp.float32),
    }


# ----------------------------- test ------------------------------------------


def _run_case(key, out_dim, in_dim, rank):
    keys = jax.random.split(key, 8)
    # The "inputs" to this module are an FC weight (out_dim, in_dim) and its bias.
    w = jax.random.normal(keys[0], (out_dim, in_dim), jnp.float32)
    b = jax.random.normal(keys[1], (out_dim,), jnp.float32)
    inv_sqrt_r = 1.0 / math.sqrt(rank)
    # Random params (instead of the degenerate ones/zeros init) so both the
    # multiplicative and additive paths are genuinely exercised.
    params = {
        "w_mul_out_dim": jax.random.normal(keys[2], (out_dim, rank), jnp.float32) * inv_sqrt_r,
        "w_mul_in_dim": jax.random.normal(keys[3], (in_dim, rank), jnp.float32) * inv_sqrt_r,
        "w_add_out_dim": jax.random.normal(keys[4], (out_dim, rank), jnp.float32) * inv_sqrt_r,
        "w_add_in_dim": jax.random.normal(keys[5], (in_dim, rank), jnp.float32) * inv_sqrt_r,
        "b_mul": jax.random.normal(keys[6], (out_dim,), jnp.float32),
        "b_add": jax.random.normal(keys[7], (out_dim,), jnp.float32),
    }

    w_hat, b_hat = left_weight_modulator_fc(w, params, b)
    w_hat = jax.block_until_ready(w_hat)
    b_hat = jax.block_until_ready(b_hat)

    # Pure-JAX reference.
    w_mul_ref = params["w_mul_out_dim"] @ params["w_mul_in_dim"].T
    w_add_ref = params["w_add_out_dim"] @ params["w_add_in_dim"].T
    w_ref = w * w_mul_ref + w_add_ref
    b_ref = b * params["b_mul"] + params["b_add"]
    # Tolerance allows for MXU f32-matmul precision differences vs XLA default.
    assert jnp.allclose(w_hat, w_ref, atol=1e-2, rtol=1e-2), (out_dim, in_dim)
    assert jnp.allclose(b_hat, b_ref, atol=1e-5, rtol=1e-5), (out_dim, in_dim)


if __name__ == "__main__":
    key = jax.random.PRNGKey(0)
    k1, k2, k3 = jax.random.split(key, 3)

    _run_case(k1, 128, 256, 8)    # small: full-array tiles + megacore split (grid 2x1)
    _run_case(k2, 96, 640, 8)     # non-power-of-two dims (full-dim tile fallback)
    _run_case(k3, 512, 2048, 8)   # multi-tile grid: 256x1024 tiles, grid 2x2

    print("KERNEL_OK")
</pallas_src>

<mosaic_0001>
module attributes {stable_mosaic.version = 11 : i64} {
  func.func @_leftmod_w_kernel(%arg0: i32, %arg1: i32, %arg2: memref<64x256xf32, #tpu.memory_space<vmem>>, %arg3: memref<64x8xf32, #tpu.memory_space<vmem>>, %arg4: memref<8x256xf32, #tpu.memory_space<vmem>>, %arg5: memref<64x8xf32, #tpu.memory_space<vmem>>, %arg6: memref<8x256xf32, #tpu.memory_space<vmem>>, %arg7: memref<64x256xf32, #tpu.memory_space<vmem>>) attributes {dimension_semantics = [#tpu.dimension_semantics<parallel>, #tpu.dimension_semantics<parallel>], iteration_bounds = array<i64: 2, 1>, scalar_prefetch = 0 : i64, scratch_operands = 0 : i64, tpu.core_type = #tpu.core_type<tc>, window_params = [{transform_indices = @transform_0, window_bounds = array<i64: 64, 256>}, {transform_indices = @transform_1, window_bounds = array<i64: 64, 8>}, {transform_indices = @transform_2, window_bounds = array<i64: 8, 256>}, {transform_indices = @transform_3, window_bounds = array<i64: 64, 8>}, {transform_indices = @transform_4, window_bounds = array<i64: 8, 256>}, {transform_indices = @transform_5, window_bounds = array<i64: 64, 256>}]} {
    %c0 = arith.constant 0 : index
    %c0_0 = arith.constant 0 : index
    %0 = vector.load %arg3[%c0, %c0_0] : memref<64x8xf32, #tpu.memory_space<vmem>>, vector<64x8xf32>
    %c0_1 = arith.constant 0 : index
    %c0_2 = arith.constant 0 : index
    %1 = vector.load %arg4[%c0_1, %c0_2] : memref<8x256xf32, #tpu.memory_space<vmem>>, vector<8x256xf32>
    %cst = arith.constant dense<0.000000e+00> : vector<64x256xf32>
    %2 = tpu.matmul %0, %1, %cst {dimension_numbers = #tpu.dot_dimension_numbers<[1], [0], [0], [1], [0, 0, 1, 1], [], []>} : vector<64x8xf32>, vector<8x256xf32>, vector<64x256xf32> -> vector<64x256xf32>
    %c0_3 = arith.constant 0 : index
    %c0_4 = arith.constant 0 : index
    %3 = vector.load %arg5[%c0_3, %c0_4] : memref<64x8xf32, #tpu.memory_space<vmem>>, vector<64x8xf32>
    %c0_5 = arith.constant 0 : index
    %c0_6 = arith.constant 0 : index
    %4 = vector.load %arg6[%c0_5, %c0_6] : memref<8x256xf32, #tpu.memory_space<vmem>>, vector<8x256xf32>
    %cst_7 = arith.constant dense<0.000000e+00> : vector<64x256xf32>
    %5 = tpu.matmul %3, %4, %cst_7 {dimension_numbers = #tpu.dot_dimension_numbers<[1], [0], [0], [1], [0, 0, 1, 1], [], []>} : vector<64x8xf32>, vector<8x256xf32>, vector<64x256xf32> -> vector<64x256xf32>
    %c0_8 = arith.constant 0 : index
    %c0_9 = arith.constant 0 : index
    %6 = vector.load %arg2[%c0_8, %c0_9] : memref<64x256xf32, #tpu.memory_space<vmem>>, vector<64x256xf32>
    %7 = arith.mulf %6, %2 : vector<64x256xf32>
    %8 = arith.addf %7, %5 : vector<64x256xf32>
    %c0_10 = arith.constant 0 : index
    %c0_11 = arith.constant 0 : index
    %9 = vector.load %arg7[%c0_10, %c0_11] : memref<64x256xf32, #tpu.memory_space<vmem>>, vector<64x256xf32>
    tpu.vector_store %arg7[%c0_10, %c0_11], %8 {strides = array<i32>} : memref<64x256xf32, #tpu.memory_space<vmem>>, vector<64x256xf32>,
    return
  }
  func.func @transform_0(%arg0: i32, %arg1: i32) -> (i32, i32) {
    %c0_i32 = arith.constant 0 : i32
    return %arg0, %arg1 : i32, i32
  }
  func.func @transform_1(%arg0: i32, %arg1: i32) -> (i32, i32) {
    %c0_i32 = arith.constant 0 : i32
    %c0_i32_0 = arith.constant 0 : i32
    return %arg0, %c0_i32 : i32, i32
  }
  func.func @transform_2(%arg0: i32, %arg1: i32) -> (i32, i32) {
    %c0_i32 = arith.constant 0 : i32
    %c0_i32_0 = arith.constant 0 : i32
    return %c0_i32, %arg1 : i32, i32
  }
  func.func @transform_3(%arg0: i32, %arg1: i32) -> (i32, i32) {
    %c0_i32 = arith.constant 0 : i32
    %c0_i32_0 = arith.constant 0 : i32
    return %arg0, %c0_i32 : i32, i32
  }
  func.func @transform_4(%arg0: i32, %arg1: i32) -> (i32, i32) {
    %c0_i32 = arith.constant 0 : i32
    %c0_i32_0 = arith.constant 0 : i32
    return %c0_i32, %arg1 : i32, i32
  }
  func.func @transform_5(%arg0: i32, %arg1: i32) -> (i32, i32) {
    %c0_i32 = arith.constant 0 : i32
    return %arg0, %arg1 : i32, i32
  }
}

</mosaic_0001>

<bundles_post_ra>
// kernel: tpu_custom_call.1
= control target key start
LH: loop header
LB: loop body
LE: loop exit
PB: predicated region body
PF: predicated region fallthrough
CT: control target
= control target key end

     0   :  { %10 = vsyncpa [#allocation3], 0  ;;  %s1336_s0 = inlined_call_operand.vmem [shape: f32[128,256], index: 0, kind: input, shape index: {}]   ;;  %s1337_s1 = inlined_call_operand.vmem [shape: f32[128,8], index: 1, kind: input, shape index: {}]   ;;  %s1338_s2 = inlined_call_operand.vmem [shape: f32[8,256], index: 2, kind: input, shape index: {}]   ;;  %s1339_s3 = inlined_call_operand.vmem [shape: f32[128,8], index: 3, kind: input, shape index: {}]   ;;  %s1340_s4 = inlined_call_operand.hbm [shape: f32[8,256], index: 4, kind: input, shape index: {}]   ;;  %s1341_s5 = inlined_call_operand.hbm [shape: f32[128,256], index: 5, kind: output, shape index: {}]  }
   0x1   :  { %11 = vsyncpa [#allocation4], 0 }
   0x2   :  { %13 = vsyncpa [#allocation4 + $0x1], 0  ;;  %s1109_s18 = smov 0   ;;  %s1111_s19 = smov 0  }
   0x3   :  { %s1113_s20 = smov 0   ;;  %s1115_s21 = smov 0  }
   0x4   :  { %s1117_s22 = smov 0   ;;  %s1119_s23 = smov 0  }
   0x5 LB: > { %s856_s24 = sadd.s32 4294967295, %s1072_s23   ;;  %s857_s25 = sadd.s32 4294967294, %s1072_s23   ;;  %s1072_s23 = sphi %s1119_s23, %s19_s23   ;;  %s1068_s22 = sphi %s1117_s22, %s1350_s22   ;;  %s1064_s21 = sphi %s1115_s21, %s1349_s21   ;;  %s1060_s20 = sphi %s1113_s20, %s1348_s20   ;;  %s1056_s19 = sphi %s1111_s19, %s1347_s19   ;;  %s1052_s18 = sphi %s1109_s18, %s1346_s18  }
   0x6   : > { %s31_s26 = sadd.s32 1, %s1068_s22  ;;  %s172_s27 = sadd.s32 1, %s1060_s20 }
   0x7   : > { %p33_p0 = scmp.ge.s32.totalorder %s31_s26, 2  ;;  %p182_p1 = scmp.ne.s32.totalorder %s1060_s20, %s1056_s19 }
   0x8   : > { %p183_p2 = scmp.eq.s32.totalorder %s856_s24, 1  ;;  %p188_p3 = scmp.ne.s32.totalorder %s1056_s19, %s1052_s18 }
   0x9   : > { %s1352_s26 = smov (%p33_p0, %s31_s26), 0  ;;  %p189_p5 = scmp.eq.s32.totalorder %s857_s25, 1 }
   0xa   : > { %p1149_p4 = por %p183_p2, %p182_p1  ;;  %s167_s29 = ssub.s32 %s1068_s22, %s1352_s26 }
   0xb   : > { %p858_p6 = scmp.ge.s32.totalorder %s1072_s23, 1  ;;  %p170_p7 = scmp.eq.s32.totalorder %s167_s29, 0 }
   0xc   : > { %p1156_p8 = por %p189_p5, %p188_p3  ;;  %p196_p9 = scmp.lt.s32.totalorder %s1072_s23, 3 }
   0xd   : > { %s1162_s6 = scalar_select %p170_p7, %s1060_s20, %s172_s27  }
   0xe   : > { %p1164_p10 = pnand %p858_p6, %p196_p9  ;;  %p1168_p11 = scmp.eq.s32.totalorder %s856_s24, 0 }
   0xf   : > { %s1074_s9 = smov [#allocation2]  }
  0x10   : > { %p903_p12 = pneg %p1164_p10  ;;  %s221_s10 = sshll.u32 %s1074_s9, 4  ;;  %s222_s10 = int_to_ptr.vmem [resolvable:$true] %s221_s10 }
  0x11   : > { %s977_s11 = scalar_lea.vmem %s222_s10, 256  ;;  %p985_p5 = scmp.lt.s32.totalorder %s222_s10, %s222_s10 }
  0x12   : > { %p904_p13 = pnand %p1168_p11, %p903_p12  ;;  %p978_p1 = scmp.ne.s32.totalorder %s222_s10, %s977_s11 }
  0x13   : > { %p986_p6 = scmp.lt.s32.totalorder %s977_s11, %s977_s11 }
  0x14   : > { %p968_p0 = pneg %p904_p13 }
  0x15   : > { %p987_p7 = por %p986_p6, %p985_p5 }
  0x16   : > { %p980_p2 = pnand %p978_p1, %p968_p0 }
  0x18   : > { %p981_p3 = pneg %p980_p2 }
  0x1a   : > { %p988_p9 = pnand %p987_p7, %p981_p3 }
  0x1c   : > { %991 = shalt.err (!%p988_p9)
}
  0x1d   : > { %906 = dma.hbm_to_vmem [thread:$0]  (!%p904_p13), %s1340_s4, 256, %s222_s10, [#allocation3]  }
  0x1e   : > { %267 = sbr.rel (%p1164_p10) target bundleno = 284 (0x11c), region = 40 }
  0x23   : > { %1043 = dma.done.wait (%p1168_p11), [#allocation3], 256  }
  0x24   : > { %1045 = vsyncadd (%p1168_p11), [#allocation3], 4294967040  ;;  %s865_s14 = sshll.u32 %s1064_s21, 3  ;;  %v1075_v0 = vmov 0.0   ;;  %v357_v1 = vld [vmem:[%s1338_s2 + $0x8] sm:$0xff]  ;;  %v356_v3 = vld [vmem:[%s1338_s2] sm:$0xff] }
  0x25   : > { %447 = vmatprep.mubr.f32.mxu0 %v1075_v0  ;;  %594 = vmatprep.mubr.f32.mxu1 %v1075_v0  ;;  %p317_p12 = scmp.lt.s32.totalorder %s865_s14, 15  ;;  %v505_v2 = vld [vmem:[#allocation2 + $0x8] sm:$0xff]  ;;  %vm358_vm0 = vcmask 64512   ;;  %v504_v4 = vld [vmem:[#allocation2] sm:$0xff]  ;;  %s312_s16 = sand.u32 1, %s1056_s19  }
  0x26   : > { %413 = vmatprep.subr.mxu0 %v357_v1  ;;  %560 = vmatprep.subr.mxu1 %v505_v2  ;;  %s864_s17 = sshll.u32 %s312_s16, 7  ;;  %s1076_s9 = smov [#allocation5]  }
  0x27   : > { %s1354_s14 = smov (!%p317_p12, %s865_s14), 15  ;;  %414 = vmatpush1.msra.mxu0 %v356_v3  ;;  %561 = vmatpush1.msra.mxu1 %v504_v4 }
  0x28   : > { %s869_s15 = sshll.u32 %s1354_s14, 3  ;;  %s894_s11 = sshll.u32 %s1354_s14, 4 }
  0x29   : > { %s1192_s24 = scalar_lea.vmem %s1337_s1, %s869_s15  ;;  %s1203_s10 = scalar_lea.vmem %s1339_s3, %s869_s15 }
  0x2a   : > { %v348_v5 = vld [vmem:[%s1192_s24] sm:$0xff]  ;;  %v349_v7 = vld [vmem:[%s1192_s24 + $0x8] sm:$0xff]  ;;  %v350_v9 = vld [vmem:[%s1192_s24 + $0x10] sm:$0xff]  ;;  %s1241_s15 = scalar_lea.vmem %s1336_s0, %s894_s11  ;;  %s1250_s14 = scalar_lea.vmem [#allocation5], %s864_s17 }
  0x2b   : > { %v496_v6 = vld [vmem:[%s1203_s10] sm:$0xff]  ;;  %872 = vmatmul.mubr.msk.f32.vlgmr.msra.gmra.mxu0 %vm358_vm0, %v348_v5  ;;  %v497_v8 = vld [vmem:[%s1203_s10 + $0x8] sm:$0xff]  ;;  %v498_v10 = vld [vmem:[%s1203_s10 + $0x10] sm:$0xff]  ;;  %s724_s25 = sshll.u32 %s1250_s14, 4  ;;  %s1285_s25 = int_to_ptr.vmem [resolvable:$true] %s724_s25 }
  0x2c   : > { %880 = vmatmul.mubr.msk.f32.vlgmr.msra.gmra.mxu1 %vm358_vm0, %v496_v6  ;;  %453 = vmatprep.mubr.f32.mxu0 %v1075_v0  ;;  %v351_v11 = vld [vmem:[%s1192_s24 + $0x18] sm:$0xff]  ;;  %v352_v13 = vld [vmem:[%s1192_s24 + $0x20] sm:$0xff]  ;;  %v353_v15 = vld [vmem:[%s1192_s24 + $0x28] sm:$0xff]  ;;  %s992_s8 = scalar_lea.vmem %s1285_s25, 2048 }
  0x2d   : > { %600 = vmatprep.mubr.f32.mxu1 %v1075_v0  ;;  %v499_v12 = vld [vmem:[%s1203_s10 + $0x18] sm:$0xff]  ;;  %v500_v14 = vld [vmem:[%s1203_s10 + $0x20] sm:$0xff]  ;;  %v501_v16 = vld [vmem:[%s1203_s10 + $0x28] sm:$0xff]  ;;  %p993_p10 = scmp.ne.s32.totalorder %s1285_s25, %s992_s8 }
  0x2e   : > { %v354_v17 = vld [vmem:[%s1192_s24 + $0x30] sm:$0xff]  ;;  %v355_v19 = vld [vmem:[%s1192_s24 + $0x38] sm:$0xff]  ;;  %v643_v21 = vld [vmem:[%s1241_s15] sm:$0xff]  ;;  %s896_s24 = sshll.u32 %s1064_s21, 11  ;;  %s1291_s21 = scalar_lea.sflag [#allocation4], %s312_s16 }
  0x2f   : > { %873 = vmatmul.mubr.msk.f32.gmra.mxu0 %vm358_vm0, %v349_v7  ;;  %v502_v18 = vld [vmem:[%s1203_s10 + $0x30] sm:$0xff]  ;;  %v503_v20 = vld [vmem:[%s1203_s10 + $0x38] sm:$0xff]  ;;  %v644_v24 = vld [vmem:[%s1241_s15 + $0x8] sm:$0xff]  ;;  %s1283_s7 = scalar_lea.hbm %s1341_s5, %s896_s24  ;;  %p994_p11 = pnand %p993_p10, %p1149_p4 }
  0x30   : > { %881 = vmatmul.mubr.msk.f32.gmra.mxu1 %vm358_vm0, %v497_v8  ;;  %459 = vmatprep.mubr.f32.mxu0 %v1075_v0  ;;  %v645_v28 = vld [vmem:[%s1241_s15 + $0x10] sm:$0xff]  ;;  %v646_v33 = vld [vmem:[%s1241_s15 + $0x18] sm:$0xff]  ;;  %v647_v38 = vld [vmem:[%s1241_s15 + $0x20] sm:$0xff]  ;;  %s996_s10 = sshll.u32 %s1076_s9, 4  ;;  %s997_s10 = int_to_ptr.vmem [resolvable:$false] %s996_s10 }
  0x31   : > { %606 = vmatprep.mubr.f32.mxu1 %v1075_v0  ;;  %v648_v43 = vld [vmem:[%s1241_s15 + $0x28] sm:$0xff]  ;;  %v649_v48 = vld [vmem:[%s1241_s15 + $0x30] sm:$0xff]  ;;  %v650_v53 = vld [vmem:[%s1241_s15 + $0x38] sm:$0xff]  ;;  %p995_p13 = pneg %p994_p11  ;;  %s998_s11 = scalar_lea.vmem %s997_s10, 4096 }
  0x32   : > { %v651_v58 = vld [vmem:[%s1241_s15 + $0x40] sm:$0xff]  ;;  %v652_v63 = vld [vmem:[%s1241_s15 + $0x48] sm:$0xff]  ;;  %v653_v4 = vld [vmem:[%s1241_s15 + $0x50] sm:$0xff]  ;;  %p999_p0 = scmp.lt.s32.totalorder %s1285_s25, %s997_s10  ;;  %p1000_p1 = scmp.lt.s32.totalorder %s998_s11, %s992_s8 }
  0x33   : > { %874 = vmatmul.mubr.msk.f32.gmra.mxu0 %vm358_vm0, %v350_v9  ;;  %v654_v9 = vld [vmem:[%s1241_s15 + $0x58] sm:$0xff] }
  0x34   : > { %882 = vmatmul.mubr.msk.f32.gmra.mxu1 %vm358_vm0, %v498_v10  ;;  %465 = vmatprep.mubr.f32.mxu0 %v1075_v0  ;;  %p1001_p2 = por %p1000_p1, %p999_p0 }
  0x35   : > { %612 = vmatprep.mubr.f32.mxu1 %v1075_v0 }
  0x36   : > { %p1002_p3 = pnand %p1001_p2, %p995_p13 }
  0x37   : > { %875 = vmatmul.mubr.msk.f32.gmra.mxu0 %vm358_vm0, %v351_v11 }
  0x38   : > { %883 = vmatmul.mubr.msk.f32.gmra.mxu1 %vm358_vm0, %v499_v12  ;;  %471 = vmatprep.mubr.f32.mxu0 %v1075_v0 }
  0x39   : > { %618 = vmatprep.mubr.f32.mxu1 %v1075_v0 }
  0x3b   : > { %876 = vmatmul.mubr.msk.f32.gmra.mxu0 %vm358_vm0, %v352_v13 }
  0x3c   : > { %884 = vmatmul.mubr.msk.f32.gmra.mxu1 %vm358_vm0, %v500_v14  ;;  %477 = vmatprep.mubr.f32.mxu0 %v1075_v0  ;;  %v655_v14 = vld [vmem:[%s1241_s15 + $0x60] sm:$0xff] }
  0x3d   : > { %624 = vmatprep.mubr.f32.mxu1 %v1075_v0 }
  0x3f   : > { %877 = vmatmul.mubr.msk.f32.gmra.mxu0 %vm358_vm0, %v353_v15 }
  0x40   : > { %885 = vmatmul.mubr.msk.f32.gmra.mxu1 %vm358_vm0, %v501_v16  ;;  %483 = vmatprep.mubr.f32.mxu0 %v1075_v0 }
  0x41   : > { %630 = vmatprep.mubr.f32.mxu1 %v1075_v0 }
  0x43   : > { %878 = vmatmul.mubr.msk.f32.gmra.mxu0 %vm358_vm0, %v354_v17 }
  0x44   : > { %886 = vmatmul.mubr.msk.f32.gmra.mxu1 %vm358_vm0, %v502_v18  ;;  %489 = vmatprep.mubr.f32.mxu0 %v1075_v0 }
  0x45   : > { %636 = vmatprep.mubr.f32.mxu1 %v1075_v0 }
  0x47   : > { %879 = vmatmul.mubr.msk.f32.gmra.mxu0 %vm358_vm0, %v355_v19  ;;  %v656_v19 = vld [vmem:[%s1241_s15 + $0x68] sm:$0xff] }
  0x48   : > { %887 = vmatmul.mubr.msk.f32.gmra.mxu1 %vm358_vm0, %v503_v20 }
  0xeb   : > { %v449_v22 = vpop.f32.mrf.mxu0 }
  0xec   : > { %v596_v23 = vpop.f32.mrf.mxu1  ;;  %v659_v25 = vmul.f32 %v643_v21, %v449_v22 }
  0xed   : > { %v451_v26 = vpop.f32.mrf.mxu0 }
  0xee   : > { %v598_v27 = vpop.f32.mrf.mxu1  ;;  %v675_v29 = vadd.f32 %v659_v25, %v596_v23  ;;  %v660_v30 = vmul.f32 %v644_v24, %v451_v26  ;;  %v657_v24 = vld [vmem:[%s1241_s15 + $0x70] sm:$0xff] }
  0xef   : > { %v455_v31 = vpop.f32.mrf.mxu0 }
  0xf0   : > { %v602_v32 = vpop.f32.mrf.mxu1  ;;  %691 = vst [vmem:[%s1250_s14] sm:$0xff] %v675_v29  ;;  %v676_v34 = vadd.f32 %v660_v30, %v598_v27  ;;  %v661_v35 = vmul.f32 %v645_v28, %v455_v31  ;;  %v658_v29 = vld [vmem:[%s1241_s15 + $0x78] sm:$0xff] }
  0xf1   : > { %v457_v36 = vpop.f32.mrf.mxu0 }
  0xf2   : > { %v604_v37 = vpop.f32.mrf.mxu1  ;;  %692 = vst [vmem:[%s1250_s14 + $0x8] sm:$0xff] %v676_v34  ;;  %v677_v39 = vadd.f32 %v661_v35, %v602_v32  ;;  %v662_v40 = vmul.f32 %v646_v33, %v457_v36 }
  0xf3   : > { %v461_v41 = vpop.f32.mrf.mxu0 }
  0xf4   : > { %v608_v42 = vpop.f32.mrf.mxu1  ;;  %693 = vst [vmem:[%s1250_s14 + $0x10] sm:$0xff] %v677_v39  ;;  %v678_v44 = vadd.f32 %v662_v40, %v604_v37  ;;  %v663_v45 = vmul.f32 %v647_v38, %v461_v41 }
  0xf5   : > { %v463_v46 = vpop.f32.mrf.mxu0 }
  0xf6   : > { %v610_v47 = vpop.f32.mrf.mxu1  ;;  %694 = vst [vmem:[%s1250_s14 + $0x18] sm:$0xff] %v678_v44  ;;  %v679_v49 = vadd.f32 %v663_v45, %v608_v42  ;;  %v664_v50 = vmul.f32 %v648_v43, %v463_v46 }
  0xf7   : > { %v467_v51 = vpop.f32.mrf.mxu0 }
  0xf8   : > { %v614_v52 = vpop.f32.mrf.mxu1  ;;  %695 = vst [vmem:[%s1250_s14 + $0x20] sm:$0xff] %v679_v49  ;;  %v680_v54 = vadd.f32 %v664_v50, %v610_v47  ;;  %v665_v55 = vmul.f32 %v649_v48, %v467_v51 }
  0xf9   : > { %v469_v56 = vpop.f32.mrf.mxu0 }
  0xfa   : > { %v616_v57 = vpop.f32.mrf.mxu1  ;;  %696 = vst [vmem:[%s1250_s14 + $0x28] sm:$0xff] %v680_v54  ;;  %v681_v59 = vadd.f32 %v665_v55, %v614_v52  ;;  %v666_v60 = vmul.f32 %v650_v53, %v469_v56 }
  0xfb   : > { %v473_v61 = vpop.f32.mrf.mxu0 }
  0xfc   : > { %v620_v62 = vpop.f32.mrf.mxu1  ;;  %697 = vst [vmem:[%s1250_s14 + $0x30] sm:$0xff] %v681_v59  ;;  %v682_v0 = vadd.f32 %v666_v60, %v616_v57  ;;  %v667_v1 = vmul.f32 %v651_v58, %v473_v61 }
  0xfd   : > { %v475_v2 = vpop.f32.mrf.mxu0 }
  0xfe   : > { %v622_v3 = vpop.f32.mrf.mxu1  ;;  %698 = vst [vmem:[%s1250_s14 + $0x38] sm:$0xff] %v682_v0  ;;  %v683_v5 = vadd.f32 %v667_v1, %v620_v62  ;;  %v668_v6 = vmul.f32 %v652_v63, %v475_v2 }
  0xff   : > { %v479_v7 = vpop.f32.mrf.mxu0 }
 0x100   : > { %v626_v8 = vpop.f32.mrf.mxu1  ;;  %699 = vst [vmem:[%s1250_s14 + $0x40] sm:$0xff] %v683_v5  ;;  %v684_v10 = vadd.f32 %v668_v6, %v622_v3  ;;  %v669_v11 = vmul.f32 %v653_v4, %v479_v7 }
 0x101   : > { %v481_v12 = vpop.f32.mrf.mxu0 }
 0x102   : > { %v628_v13 = vpop.f32.mrf.mxu1  ;;  %700 = vst [vmem:[%s1250_s14 + $0x48] sm:$0xff] %v684_v10  ;;  %v685_v15 = vadd.f32 %v669_v11, %v626_v8  ;;  %v670_v16 = vmul.f32 %v654_v9, %v481_v12 }
 0x103   : > { %v485_v17 = vpop.f32.mrf.mxu0 }
 0x104   : > { %v632_v18 = vpop.f32.mrf.mxu1  ;;  %701 = vst [vmem:[%s1250_s14 + $0x50] sm:$0xff] %v685_v15  ;;  %v686_v20 = vadd.f32 %v670_v16, %v628_v13  ;;  %v671_v21 = vmul.f32 %v655_v14, %v485_v17 }
 0x105   : > { %v487_v22 = vpop.f32.mrf.mxu0 }
 0x106   : > { %v634_v23 = vpop.f32.mrf.mxu1  ;;  %702 = vst [vmem:[%s1250_s14 + $0x58] sm:$0xff] %v686_v20  ;;  %v687_v25 = vadd.f32 %v671_v21, %v632_v18  ;;  %v672_v26 = vmul.f32 %v656_v19, %v487_v22 }
 0x107   : > { %v491_v27 = vpop.f32.mrf.mxu0 }
 0x108   : > { %v638_v28 = vpop.f32.mrf.mxu1  ;;  %703 = vst [vmem:[%s1250_s14 + $0x60] sm:$0xff] %v687_v25  ;;  %v688_v30 = vadd.f32 %v672_v26, %v634_v23  ;;  %v673_v31 = vmul.f32 %v657_v24, %v491_v27 }
 0x109   : > { %v493_v32 = vpop.f32.mrf.mxu0 }
 0x10a   : > { %704 = vst [vmem:[%s1250_s14 + $0x68] sm:$0xff] %v688_v30  ;;  %v689_v33 = vadd.f32 %v673_v31, %v638_v28  ;;  %v674_v34 = vmul.f32 %v658_v29, %v493_v32  ;;  %v640_v35 = vpop.f32.mrf.mxu1 }
 0x10c   : > { %705 = vst [vmem:[%s1250_s14 + $0x70] sm:$0xff] %v689_v33  ;;  %v690_v36 = vadd.f32 %v674_v34, %v640_v35 }
 0x10e   : > { %706 = vst [vmem:[%s1250_s14 + $0x78] sm:$0xff] %v690_v36 }
 0x10f   : > { %1005 = shalt.err (!%p1002_p3)
}
 0x110   : > { %s1006_s12 = scalar_lea.hbm %s1283_s7, 2048  ;;  %s1010_s16 = scalar_lea.hbm %s1341_s5, 4096 }
 0x111   : > { %p1007_p5 = scmp.ne.s32.totalorder %s1283_s7, %s1006_s12  ;;  %p1011_p9 = scmp.lt.s32.totalorder %s1283_s7, %s1341_s5 }
 0x112   : > { %p1012_p12 = scmp.lt.s32.totalorder %s1010_s16, %s1006_s12 }
 0x113   : > { %p1008_p6 = pnand %p1007_p5, %p1149_p4 }
 0x114   : > { %p1013_p10 = por %p1012_p12, %p1011_p9 }
 0x115   : > { %p1009_p7 = pneg %p1008_p6 }
 0x117   : > { %p1014_p11 = pnand %p1013_p10, %p1009_p7 }
 0x119   : > { %1017 = shalt.err (!%p1014_p11)
}
 0x11a   : > { %s1077_s24 = smov 256   ;;  %s1078_s27 = smov 16  }
 0x11b   : > { %901 = dma.vmem_to_hbm [thread:$0]  (%p1149_p4), %s1285_s25, 2048, %s1283_s7, %s1291_s21, %s1077_s24, %s1077_s24, %s1078_s27  }
 0x11c PF: > { %p913_p13 = scmp.ge.s32.totalorder %s1072_s23, 2  ;;  %s739_s29 = sand.u32 1, %s1052_s18  }
 0x11d   : > { %s740_s8 = scalar_lea.sflag [#allocation4], %s739_s29 }
 0x11e   : > { %p908_p0 = pnand %p913_p13, %p1156_p8 }
 0x120   : > { %p909_p1 = pneg %p908_p0 }
 0x122   : > { %1047 = dma.done.wait (%p909_p1), %s740_s8, 2048  }
 0x123   : > { %1049 = vsyncadd (%p909_p1), %s740_s8, 4294965248  ;;  %s19_s23 = sadd.s32 1, %s1072_s23   ;;  %s1346_s18 = smov %s1056_s19 }
 0x124   : > { %p16_p2 = scmp.ge.s32.totalorder %s19_s23, 4   ;;  %s1347_s19 = smov %s1060_s20 }
 0x125   : > { %s1348_s20 = smov %s1162_s6  ;;  %s1349_s21 = smov %s1068_s22 }
 0x126   : > { %s1350_s22 = smov %s1352_s26  ;;  %18 = sbr.rel (!%p16_p2) target bundleno = 5 (0x5), region = 90 }
 0x12b   :  { %745 = vsyncpa [#allocation3], 1 }
 0x12c   :  { %747 = vsyncpa [#allocation3 + $0x1], 1 }
 0x12d   :  { %748 = vsyncpa [#allocation4], 1 }
 0x12e   :  { %750 = vsyncpa [#allocation4 + $0x1], 1 }

</bundles_post_ra>
